<compile_context>
chip_gen: v7x
topology: tpu7x:2x2x1
jax: 0.10.0
libtpu: 0.0.40
codegen_flags: <defaults>
</compile_context>

<pallas_src>
import functools
import math

import jax
import jax.numpy as jnp
from jax import lax
from jax.experimental import pallas as pl
from jax.experimental.pallas import tpu as pltpu


def _dice_partial_kernel(logits_ref, targets_ref, den_ref, absd_ref,
                         den_acc, absd_acc, *, n_valid):
    """Accumulate per-row sum(p + t) and sum(|p - t|) over the N grid axis."""
    k = pl.program_id(1)
    nk = pl.num_programs(1)

    @pl.when(k == 0)
    def _():
        den_acc[...] = jnp.zeros_like(den_acc)
        absd_acc[...] = jnp.zeros_like(absd_acc)

    # Widen in-register (inputs may be bf16 in HBM -> half the DMA bytes).
    x = logits_ref[...].astype(jnp.float32)
    t = targets_ref[...].astype(jnp.float32)
    # sigmoid(x) == 0.5 * (tanh(x/2) + 1): a single EUP op per element.
    p = 0.5 * (jnp.tanh(0.5 * x) + 1.0)
    s = p + t
    d = jnp.abs(p - t)

    tile = logits_ref.shape[-1]          # static block width
    lane_dense = (tile % 128 == 0)       # matches wrapper's acc/out width

    def fold(v):
        # Per-row partial reduction of a (row_block, tile) value.
        if lane_dense:
            # Lane-aligned 128-wide VPU adds into a (row_block, 128) partial;
            # no per-step XLU cross-lane reduce.
            out = v[:, 0:128]
            for j in range(1, tile // 128):
                out = out + v[:, j * 128:(j + 1) * 128]
            return out
        # Small / non-128-aligned N (single grid step): plain reduce.
        return jnp.sum(v, axis=-1, keepdims=True)

    def accumulate(sv, dv):
        den_acc[...] += fold(sv)
        absd_acc[...] += fold(dv)

    if n_valid % tile != 0:
        # Ragged N tail: only the *last* k tile has OOB lanes.  Keep the hot
        # loop unmasked; mask only on the final step with a static remainder.
        rem = n_valid % tile

        @pl.when(k != nk - 1)
        def _():
            accumulate(s, d)

        @pl.when(k == nk - 1)
        def _():
            col = lax.broadcasted_iota(jnp.int32, s.shape, 1)
            valid = col < rem
            accumulate(jnp.where(valid, s, 0.0), jnp.where(valid, d, 0.0))
    else:
        accumulate(s, d)

    @pl.when(k == nk - 1)
    def _():
        den_ref[...] = den_acc[...]
        absd_ref[...] = absd_acc[...]


@functools.partial(jax.jit,
                   static_argnames=("reduction", "tile_n", "max_row_block"))
def binary_dice_loss(logits, targets, reduction="mean",
                     tile_n=4096, max_row_block=128):
    """logits, targets: (B, H, W) (or (B, ...)). Matches the PyTorch reference."""
    if logits.shape != targets.shape:
        raise ValueError("logits and targets must have the same shape")
    b = logits.shape[0]
    n = math.prod(logits.shape[1:])
    itemsize = jnp.dtype(logits.dtype).itemsize

    # Sublane packing: view (B, N) as (B*pack, N/pack).  Row-major reshape of
    # a contiguous array -> free; fills all sublanes of each vreg even for
    # tiny batches (8 for 32-bit dtypes, 16 for 16-bit dtypes).
    if itemsize <= 2 and n % 16 == 0:
        pack = 16
    elif n % 8 == 0:
        pack = 8
    else:
        pack = 1
    rows = b * pack
    n2 = n // pack

    logits2d = logits.reshape(rows, n2)       # original dtype, no f32 copy
    targets2d = targets.reshape(rows, n2)

    # ---- tile (lane) selection: keep per-step HBM bytes constant vs dtype.
    tile_n_eff = tile_n * max(1, 4 // itemsize)
    tile_n_eff = max(128, (tile_n_eff // 128) * 128)
    tile = n2 if n2 <= tile_n_eff else tile_n_eff

    # ---- row-block selection: multiple of the sublane granule, and split
    # into >= 2 blocks whenever possible so both v7x TensorCores get work.
    gran = 16 if itemsize <= 2 else 8
    mrb = max(gran, (max_row_block // gran) * gran)
    if rows < 2 * gran:
        row_block = rows                      # single block (full dim)
    else:
        half = ((rows // 2) // gran) * gran
        row_block = max(gran, min(mrb, half))

    grid = (pl.cdiv(rows, row_block), pl.cdiv(n2, tile))

    # Lane-dense partials when the tile is 128-aligned; width-1 otherwise.
    width = 128 if tile % 128 == 0 else 1

    kernel = functools.partial(_dice_partial_kernel, n_valid=n2)

    den_rows, absd_rows = pl.pallas_call(
        kernel,
        out_shape=(jax.ShapeDtypeStruct((rows, width), jnp.float32),
                   jax.ShapeDtypeStruct((rows, width), jnp.float32)),
        grid_spec=pltpu.PrefetchScalarGridSpec(
            num_scalar_prefetch=0,
            grid=grid,
            in_specs=[
                pl.BlockSpec((row_block, tile), lambda i, k: (i, k)),
                pl.BlockSpec((row_block, tile), lambda i, k: (i, k)),
            ],
            out_specs=(
                pl.BlockSpec((row_block, width), lambda i, k: (i, 0)),
                pl.BlockSpec((row_block, width), lambda i, k: (i, 0)),
            ),
            scratch_shapes=[
                pltpu.VMEM((row_block, width), jnp.float32),
                pltpu.VMEM((row_block, width), jnp.float32),
            ],
        ),
        compiler_params=pltpu.CompilerParams(
            dimension_semantics=("parallel", "arbitrary"),
            # Larger blocks than v5e's 16 MiB default scoped VMEM; well below
            # v7x's 64 MiB physical VMEM.
            vmem_limit_bytes=48 * 1024 * 1024),
    )(logits2d, targets2d)

    # Fold packed rows / lane partials back to per-sample sums (tiny glue).
    den = jnp.sum(den_rows.reshape(b, pack * width), axis=-1)
    absd = jnp.sum(absd_rows.reshape(b, pack * width), axis=-1)
    num = den - absd                          # = sum(p + t - |p - t|)
    loss = 1.0 - num / den
    # TODO(synk): no smoothing/eps term, matching the reference (den==0 -> NaN).

    if reduction == "none":
        return loss
    elif reduction == "sum":
        return jnp.sum(loss)
    else:
        return jnp.mean(loss)


class BinaryDiceLoss:
    """Dice loss that works for soft labels — Pallas TPU port of the PyTorch module."""

    def __init__(self, reduction="mean"):
        self.reduction = reduction

    def __call__(self, logits, targets):
        return binary_dice_loss(logits, targets, reduction=self.reduction)


def _reference(logits, targets, reduction="mean"):
    b = logits.shape[0]
    p = jax.nn.sigmoid(logits.astype(jnp.float32)).reshape(b, -1)
    t = targets.astype(jnp.float32).reshape(b, -1)
    num = jnp.sum(p + t - jnp.abs(p - t), axis=-1)
    den = jnp.sum(p + t, axis=-1)
    loss = 1.0 - num / den
    if reduction == "none":
        return loss
    elif reduction == "sum":
        return jnp.sum(loss)
    return jnp.mean(loss)


if __name__ == "__main__":
    key = jax.random.PRNGKey(0)
    k1, k2, k3, k4, k5, k6 = jax.random.split(key, 6)

    # Case 1: (2, 16, 16) f32 -- pack=8, n2=32, single step, width-1 path,
    # grid=(2, 1) so both cores still get a row block.
    B, H, W = 2, 16, 16
    logits = jax.random.normal(k1, (B, H, W), dtype=jnp.float32)
    targets = jax.random.uniform(k2, (B, H, W), dtype=jnp.float32)  # soft labels

    mod = BinaryDiceLoss(reduction="mean")
    out = jax.block_until_ready(mod(logits, targets))
    ref = _reference(logits, targets, "mean")
    assert jnp.allclose(out, ref, atol=1e-5, rtol=1e-5), (out, ref)

    out_none = jax.block_until_ready(
        binary_dice_loss(logits, targets, reduction="none"))
    ref_none = _reference(logits, targets, "none")
    assert jnp.allclose(out_none, ref_none, atol=1e-5, rtol=1e-5)

    # Case 2: multi-step lane-dense with ragged tail (last-step masking).
    # (2, 48, 50): n=2400, pack=8 -> n2=300; tile_n=256 -> tiles of 256, rem 44.
    B2, H2, W2 = 2, 48, 50
    logits2 = jax.random.normal(k3, (B2, H2, W2), dtype=jnp.float32)
    targets2 = jax.random.uniform(k4, (B2, H2, W2), dtype=jnp.float32)
    out2 = jax.block_until_ready(
        binary_dice_loss(logits2, targets2, reduction="sum", tile_n=256))
    ref2 = _reference(logits2, targets2, "sum")
    assert jnp.allclose(out2, ref2, atol=1e-5, rtol=1e-5), (out2, ref2)

    # Case 3: multi-step, exactly divisible N (no masking path at all).
    # (4, 32, 64): n=2048, pack=8 -> n2=256; tile_n=128 -> 2 full tiles.
    B3, H3, W3 = 4, 32, 64
    logits3 = jax.random.normal(k5, (B3, H3, W3), dtype=jnp.float32)
    targets3 = jax.random.uniform(k6, (B3, H3, W3), dtype=jnp.float32)
    out3 = jax.block_until_ready(
        binary_dice_loss(logits3, targets3, reduction="mean", tile_n=128))
    ref3 = _reference(logits3, targets3, "mean")
    assert jnp.allclose(out3, ref3, atol=1e-5, rtol=1e-5), (out3, ref3)

    # Case 4: bf16 inputs -- pack=16, narrow DMA + in-kernel widening, tile
    # scaled x2 (tile_n=64 -> bf16 tile 128), multi-step with ragged tail.
    out4 = jax.block_until_ready(
        binary_dice_loss(logits2.astype(jnp.bfloat16),
                         targets2.astype(jnp.bfloat16),
                         reduction="mean", tile_n=64))
    ref4 = _reference(logits2.astype(jnp.bfloat16),
                      targets2.astype(jnp.bfloat16), "mean")
    assert jnp.allclose(out4, ref4, atol=1e-4, rtol=1e-4), (out4, ref4)

    print("KERNEL_OK")
</pallas_src>

<mosaic_0001>
module attributes {stable_mosaic.version = 11 : i64} {
  func.func @_dice_partial_kernel(%arg0: i32, %arg1: i32, %arg2: memref<8x32xf32, #tpu.memory_space<vmem>>, %arg3: memref<8x32xf32, #tpu.memory_space<vmem>>, %arg4: memref<8x1xf32, #tpu.memory_space<vmem>>, %arg5: memref<8x1xf32, #tpu.memory_space<vmem>>, %arg6: memref<8x1xf32, #tpu.memory_space<vmem>>, %arg7: memref<8x1xf32, #tpu.memory_space<vmem>>) attributes {dimension_semantics = [#tpu.dimension_semantics<parallel>, #tpu.dimension_semantics<arbitrary>], iteration_bounds = array<i64: 2, 1>, scalar_prefetch = 0 : i64, scratch_operands = 2 : i64, tpu.core_type = #tpu.core_type<tc>, window_params = [{transform_indices = @transform_0, window_bounds = array<i64: 8, 32>}, {transform_indices = @transform_1, window_bounds = array<i64: 8, 32>}, {transform_indices = @transform_2, window_bounds = array<i64: 8, 1>}, {transform_indices = @transform_3, window_bounds = array<i64: 8, 1>}]} {
    %c0_i32 = arith.constant 0 : i32
    %0 = arith.cmpi eq, %arg1, %c0_i32 : i32
    %1 = arith.extui %0 : i1 to i32
    %c0_i32_0 = arith.constant 0 : i32
    %2 = arith.cmpi ne, %1, %c0_i32_0 : i32
    scf.if %2 {
      %cst_18 = arith.constant 0.000000e+00 : f32
      %28 = vector.broadcast %cst_18 : f32 to vector<8x1xf32>
      %c0_19 = arith.constant 0 : index
      %c0_20 = arith.constant 0 : index
      %29 = vector.load %arg6[%c0_19, %c0_20] : memref<8x1xf32, #tpu.memory_space<vmem>>, vector<8x1xf32>
      tpu.vector_store %arg6[%c0_19, %c0_20], %28 {strides = array<i32>} : memref<8x1xf32, #tpu.memory_space<vmem>>, vector<8x1xf32>,
      %cst_21 = arith.constant 0.000000e+00 : f32
      %30 = vector.broadcast %cst_21 : f32 to vector<8x1xf32>
      %c0_22 = arith.constant 0 : index
      %c0_23 = arith.constant 0 : index
      %31 = vector.load %arg7[%c0_22, %c0_23] : memref<8x1xf32, #tpu.memory_space<vmem>>, vector<8x1xf32>
      tpu.vector_store %arg7[%c0_22, %c0_23], %30 {strides = array<i32>} : memref<8x1xf32, #tpu.memory_space<vmem>>, vector<8x1xf32>,
    } else {
    }
    %c0 = arith.constant 0 : index
    %c0_1 = arith.constant 0 : index
    %3 = vector.load %arg2[%c0, %c0_1] : memref<8x32xf32, #tpu.memory_space<vmem>>, vector<8x32xf32>
    %c0_2 = arith.constant 0 : index
    %c0_3 = arith.constant 0 : index
    %4 = vector.load %arg3[%c0_2, %c0_3] : memref<8x32xf32, #tpu.memory_space<vmem>>, vector<8x32xf32>
    %cst = arith.constant 5.000000e-01 : f32
    %5 = vector.broadcast %cst : f32 to vector<8x32xf32>
    %6 = arith.mulf %5, %3 : vector<8x32xf32>
    %7 = math.tanh %6 : vector<8x32xf32>
    %cst_4 = arith.constant 1.000000e+00 : f32
    %8 = vector.broadcast %cst_4 : f32 to vector<8x32xf32>
    %9 = arith.addf %7, %8 : vector<8x32xf32>
    %cst_5 = arith.constant 5.000000e-01 : f32
    %10 = vector.broadcast %cst_5 : f32 to vector<8x32xf32>
    %11 = arith.mulf %10, %9 : vector<8x32xf32>
    %12 = arith.addf %11, %4 : vector<8x32xf32>
    %13 = arith.subf %11, %4 : vector<8x32xf32>
    %14 = math.absf %13 : vector<8x32xf32>
    %c0_6 = arith.constant 0 : index
    %c0_7 = arith.constant 0 : index
    %15 = vector.load %arg6[%c0_6, %c0_7] : memref<8x1xf32, #tpu.memory_space<vmem>>, vector<8x1xf32>
    %cst_8 = arith.constant dense<0.000000e+00> : vector<8xf32>
    %16 = vector.multi_reduction <add>, %12, %cst_8 [1] : vector<8x32xf32> to vector<8xf32>
    %17 = vector.shape_cast %16 : vector<8xf32> to vector<8x1xf32>
    %18 = arith.addf %15, %17 : vector<8x1xf32>
    %c0_9 = arith.constant 0 : index
    %c0_10 = arith.constant 0 : index
    %19 = vector.load %arg6[%c0_9, %c0_10] : memref<8x1xf32, #tpu.memory_space<vmem>>, vector<8x1xf32>
    tpu.vector_store %arg6[%c0_9, %c0_10], %18 {strides = array<i32>} : memref<8x1xf32, #tpu.memory_space<vmem>>, vector<8x1xf32>,
    %c0_11 = arith.constant 0 : index
    %c0_12 = arith.constant 0 : index
    %20 = vector.load %arg7[%c0_11, %c0_12] : memref<8x1xf32, #tpu.memory_space<vmem>>, vector<8x1xf32>
    %cst_13 = arith.constant dense<0.000000e+00> : vector<8xf32>
    %21 = vector.multi_reduction <add>, %14, %cst_13 [1] : vector<8x32xf32> to vector<8xf32>
    %22 = vector.shape_cast %21 : vector<8xf32> to vector<8x1xf32>
    %23 = arith.addf %20, %22 : vector<8x1xf32>
    %c0_14 = arith.constant 0 : index
    %c0_15 = arith.constant 0 : index
    %24 = vector.load %arg7[%c0_14, %c0_15] : memref<8x1xf32, #tpu.memory_space<vmem>>, vector<8x1xf32>
    tpu.vector_store %arg7[%c0_14, %c0_15], %23 {strides = array<i32>} : memref<8x1xf32, #tpu.memory_space<vmem>>, vector<8x1xf32>,
    %c0_i32_16 = arith.constant 0 : i32
    %25 = arith.cmpi eq, %arg1, %c0_i32_16 : i32
    %26 = arith.extui %25 : i1 to i32
    %c0_i32_17 = arith.constant 0 : i32
    %27 = arith.cmpi ne, %26, %c0_i32_17 : i32
    scf.if %27 {
      %c0_18 = arith.constant 0 : index
      %c0_19 = arith.constant 0 : index
      %28 = vector.load %arg6[%c0_18, %c0_19] : memref<8x1xf32, #tpu.memory_space<vmem>>, vector<8x1xf32>
      %c0_20 = arith.constant 0 : index
      %c0_21 = arith.constant 0 : index
      %29 = vector.load %arg4[%c0_20, %c0_21] : memref<8x1xf32, #tpu.memory_space<vmem>>, vector<8x1xf32>
      tpu.vector_store %arg4[%c0_20, %c0_21], %28 {strides = array<i32>} : memref<8x1xf32, #tpu.memory_space<vmem>>, vector<8x1xf32>,
      %c0_22 = arith.constant 0 : index
      %c0_23 = arith.constant 0 : index
      %30 = vector.load %arg7[%c0_22, %c0_23] : memref<8x1xf32, #tpu.memory_space<vmem>>, vector<8x1xf32>
      %c0_24 = arith.constant 0 : index
      %c0_25 = arith.constant 0 : index
      %31 = vector.load %arg5[%c0_24, %c0_25] : memref<8x1xf32, #tpu.memory_space<vmem>>, vector<8x1xf32>
      tpu.vector_store %arg5[%c0_24, %c0_25], %30 {strides = array<i32>} : memref<8x1xf32, #tpu.memory_space<vmem>>, vector<8x1xf32>,
    } else {
    }
    return
  }
  func.func @transform_0(%arg0: i32, %arg1: i32) -> (i32, i32) {
    %c0_i32 = arith.constant 0 : i32
    return %arg0, %arg1 : i32, i32
  }
  func.func @transform_1(%arg0: i32, %arg1: i32) -> (i32, i32) {
    %c0_i32 = arith.constant 0 : i32
    return %arg0, %arg1 : i32, i32
  }
  func.func @transform_2(%arg0: i32, %arg1: i32) -> (i32, i32) {
    %c0_i32 = arith.constant 0 : i32
    %c0_i32_0 = arith.constant 0 : i32
    return %arg0, %c0_i32 : i32, i32
  }
  func.func @transform_3(%arg0: i32, %arg1: i32) -> (i32, i32) {
    %c0_i32 = arith.constant 0 : i32
    %c0_i32_0 = arith.constant 0 : i32
    return %arg0, %c0_i32 : i32, i32
  }
}

</mosaic_0001>

<bundles_post_ra>
// kernel: binary_dice_loss.1
= control target key start
LH: loop header
LB: loop body
LE: loop exit
PB: predicated region body
PF: predicated region fallthrough
CT: control target
= control target key end

     0   :  { %s458_s12 = smov 0   ;;  %s460_s13 = smov 0   ;;  %s509_s0 = inlined_call_operand.vmem [shape: f32[16,32], index: 0, kind: input, shape index: {}]   ;;  %s510_s1 = inlined_call_operand.vmem [shape: f32[16,32], index: 1, kind: input, shape index: {}]   ;;  %s511_s2 = inlined_call_operand.vmem [shape: f32[16,1], index: 2, kind: output, shape index: {0}]   ;;  %s512_s3 = inlined_call_operand.vmem [shape: f32[16,1], index: 3, kind: output, shape index: {1}]  }
   0x1   :  { %s462_s14 = smov 0  }
   0x2 LB: > { %s26_s15 = sadd.s32 1, %s431_s13  ;;  %p379_p0 = scmp.ge.s32.totalorder %s435_s14, 1  ;;  %s435_s14 = sphi %s462_s14, %s14_s14   ;;  %s431_s13 = sphi %s460_s13, %s514_s13   ;;  %s427_s12 = sphi %s458_s12, %s513_s12  }
   0x3   : > { %p28_p1 = scmp.ge.s32.totalorder %s26_s15, 2  ;;  %p170_p2 = scmp.lt.s32.totalorder %s435_s14, 3 }
   0x5   : > { %s516_s15 = smov (%p28_p1, %s26_s15), 0  ;;  %p171_p3 = pnand %p379_p0, %p170_p2 }
   0x6   : > { %p206_p4 = scmp.lt.s32.totalorder (!%p171_p3), %s427_s12, 1  ;;  %vm232_vm0 = vcmask (!%p171_p3), 7168   ;;  %v437_v0 = vmov (!%p171_p3), 0.0   ;;  %vm245_vm1 = vcmask (!%p171_p3), 261120  }
   0x7   : > { %174 = sbr.rel (%p171_p3) target bundleno = 195 (0xc3), region = 28  ;;  %233 = vst.msk [vmem:[#allocation2] sm:$0xff] (!%p171_p3), %vm232_vm0, %v437_v0  ;;  %234 = vst.msk [vmem:[#allocation3] sm:$0xff] (!%p171_p3), %vm232_vm0, %v437_v0 }
   0xe   : > { %s518_s12 = smov (!%p206_p4, %s427_s12), 1  ;;  %v244_v12 = vld [vmem:[#allocation2] sm:$0xff]  ;;  %v252_v15 = vld [vmem:[#allocation3] sm:$0xff] }
   0xf   : > { %s478_s16 = sshll.u32 %s518_s12, 3 }
  0x10   : > { %s212_s19 = scalar_lea.vmem %s509_s0, %s478_s16  ;;  %s219_s22 = scalar_lea.vmem %s510_s1, %s478_s16 }
  0x11   : > { %v235_v1 = vld [vmem:[%s212_s19] sm:$0xff]  ;;  %s223_s25 = scalar_lea.vmem %s511_s2, %s478_s16  ;;  %s227_s28 = scalar_lea.vmem %s512_s3, %s478_s16 }
  0x12   : > { %v237_v2 = vmul.f32 0.5, %v235_v1  ;;  %v236_v5 = vld [vmem:[%s219_s22] sm:$0xff] }
  0x14   : > { %411 = vtanh.f32 %v237_v2 }
  0x1e   : > { %v412_v3 = vpop.eup %411 }
  0x1f   : > { %v239_v4 = vadd.f32 1.0, %v412_v3 }
  0x21   : > { %v240_v6 = vmul.f32 0.5, %v239_v4 }
  0x23   : > { %v241_v7 = vadd.f32 %v240_v6, %v236_v5  ;;  %v242_v8 = vsub.f32 %v240_v6, %v236_v5 }
  0x25   : > { %v246_v9 = vsel %vm245_vm1, %v241_v7, 0.0  ;;  %v243_v10 = vand.u32 2147483647, %v242_v8 }
  0x26   : > { %247 = vadd.xlane.f32.xlu0 %v246_v9 }
  0x27   : > { %v253_v11 = vsel %vm245_vm1, %v243_v10, 0.0 }
  0x2a   : > { %254 = vadd.xlane.f32.xlu0 %v253_v11 }
  0xb3   : > { %v248_v13 = vpop.xlane.xlu0 %247 }
  0xb4   : > { %v249_v14 = vadd.f32 %v248_v13, %v244_v12 }
  0xb6   : > { %251 = vst.msk [vmem:[#allocation2] sm:$0xff] %vm232_vm0, %v249_v14 }
  0xb7   : > { %v255_v16 = vpop.xlane.xlu0 %254 }
  0xb8   : > { %v256_v17 = vadd.f32 %v255_v16, %v252_v15 }
  0xba   : > { %257 = vst.msk [vmem:[#allocation3] sm:$0xff] %vm232_vm0, %v256_v17 }
  0xbd   : > { %v261_v18 = vld [vmem:[#allocation2] sm:$0xff] }
  0xbe   : > { %262 = vst.msk [vmem:[%s223_s25] sm:$0xff] %vm232_vm0, %v261_v18 }
  0xc1   : > { %v263_v19 = vld [vmem:[#allocation3] sm:$0xff] }
  0xc2   : > { %264 = vst.msk [vmem:[%s227_s28] sm:$0xff] %vm232_vm0, %v263_v19 }
  0xc3 PF: > { %s14_s14 = sadd.s32 1, %s435_s14   ;;  %s513_s12 = smov %s431_s13 }
  0xc4   : > { %p11_p5 = scmp.ge.s32.totalorder %s14_s14, 4   ;;  %s514_s13 = smov %s516_s15 }
  0xc6   :  { %13 = sbr.rel (!%p11_p5) target bundleno = 2 (0x2), region = 81 }

</bundles_post_ra>
